<compile_context>
chip_gen: v6e
topology: v6e:2x2x1
jax: 0.10.0
libtpu: 0.0.40
codegen_flags: <defaults>
</compile_context>

<pallas_src>
import functools
import math

import jax
import jax.numpy as jnp
from jax.experimental import pallas as pl
from jax.experimental.pallas import tpu as pltpu


_LANE = 128           # lane-dense multiple for all feature dims
_SUBLANE = 8          # sublane multiple for row tiles
_MID_UNROLL_MAX = 4   # statically unroll the middle-layer loop up to this depth


def _round_up(x: int, m: int) -> int:
    return ((x + m - 1) // m) * m


def _gelu_exact(h):
    # torch.nn.GELU() default = exact erf-based GELU; epilogue kept in f32.
    return 0.5 * h * (1.0 + jax.lax.erf(h * jnp.float32(1.0 / math.sqrt(2.0))))


# --------------------------------------------------------------------------- #
# Kernel
# --------------------------------------------------------------------------- #
def _make_mlp_kernel(num_mid: int, single_linear: bool, compute_dtype):
    """Builds the fused per-M-tile kernel.

    Ref layout (non-degenerate case):
      x_ref (tm, P_in), w_first (P_in, P_hid), b_first (1, P_hid),
      [w_mid (num_mid, P_hid, P_hid), b_mid (num_mid, 1, P_hid)]  (if num_mid>0),
      w_last (P_hid, P_out), b_last (1, P_out), o_ref (tm, P_out)
    """
    if single_linear:
        def kernel(x_ref, w_ref, b_ref, o_ref):
            y = jnp.dot(x_ref[...].astype(compute_dtype), w_ref[...],
                        preferred_element_type=jnp.float32)
            o_ref[...] = (y + b_ref[...].astype(jnp.float32)).astype(o_ref.dtype)
        return kernel

    unroll_mid = num_mid <= _MID_UNROLL_MAX

    def kernel(x_ref, w_first_ref, b_first_ref, *rest):
        if num_mid > 0:
            w_mid_ref, b_mid_ref, w_last_ref, b_last_ref, o_ref = rest
        else:
            w_last_ref, b_last_ref, o_ref = rest

        # First layer: Linear + GELU (dropout = identity in eval mode).
        h = jnp.dot(x_ref[...].astype(compute_dtype), w_first_ref[...],
                    preferred_element_type=jnp.float32)
        h = _gelu_exact(h + b_first_ref[...].astype(jnp.float32))

        if num_mid > 0:
            def mid_layer(l, h):
                y = jnp.dot(h.astype(compute_dtype), w_mid_ref[l],
                            preferred_element_type=jnp.float32)
                return _gelu_exact(y + b_mid_ref[l].astype(jnp.float32))

            if unroll_mid:
                for l in range(num_mid):
                    h = mid_layer(l, h)
            else:
                h = jax.lax.fori_loop(0, num_mid, mid_layer, h)

        # Final Linear (no activation).
        y = jnp.dot(h.astype(compute_dtype), w_last_ref[...],
                    preferred_element_type=jnp.float32)
        o_ref[...] = (y + b_last_ref[...].astype(jnp.float32)).astype(o_ref.dtype)

    return kernel


# --------------------------------------------------------------------------- #
# Parameter init & one-time prep
# --------------------------------------------------------------------------- #
def init_mlp_params(key, input_dim, output_dim, hidden_dim, num_layers):
    """Deterministic init matching torch.nn.Linear default: U(+-1/sqrt(fan_in))."""
    if num_layers <= 0:
        dims = [(input_dim, output_dim)]
    else:
        dims = [(input_dim, hidden_dim)]
        for _ in range(num_layers - 1):
            dims.append((hidden_dim, hidden_dim))
        dims.append((hidden_dim, output_dim))
    params = []
    for (fan_in, fan_out) in dims:
        key, kw, kb = jax.random.split(key, 3)
        bound = 1.0 / math.sqrt(fan_in)
        w = jax.random.uniform(kw, (fan_in, fan_out), jnp.float32, -bound, bound)
        b = jax.random.uniform(kb, (fan_out,), jnp.float32, -bound, bound)
        params.append((w, b))
    return params


def prepare_mlp_params(params, mxu_dtype=jnp.bfloat16):
    """One-time prep: zero-pad each layer boundary to a lane-dense multiple of
    128 and stack the square middle layers.  Zero padding is exact
    (zero weight rows/cols + zero bias + GELU(0)=0).  Hoisted out of the
    per-call forward so no padding / dynamic-update-slice chain sits on the
    forward critical path."""
    L = len(params)
    in_dim = params[0][0].shape[0]
    out_dim = params[-1][0].shape[1]
    p_in = _round_up(in_dim, _LANE)
    p_out = _round_up(out_dim, _LANE)

    def pad_w(w, rows, cols):
        return (jnp.zeros((rows, cols), mxu_dtype)
                .at[: w.shape[0], : w.shape[1]].set(w.astype(mxu_dtype)))

    def pad_b(b, cols):
        return jnp.zeros((1, cols), jnp.float32).at[0, : b.shape[0]].set(b.astype(jnp.float32))

    if L == 1:  # num_layers <= 0: a single Linear(input_dim, output_dim)
        w, b = params[0]
        return dict(single_linear=True, num_mid=0,
                    in_dim=in_dim, out_dim=out_dim,
                    p_in=p_in, p_hid=p_out, p_out=p_out,
                    ops=(pad_w(w, p_in, p_out), pad_b(b, p_out)),
                    compute_dtype=mxu_dtype)

    hid = params[0][0].shape[1]
    p_hid = _round_up(hid, _LANE)
    num_mid = L - 2

    ops = [pad_w(params[0][0], p_in, p_hid), pad_b(params[0][1], p_hid)]
    if num_mid > 0:
        ops.append(jnp.stack([pad_w(w, p_hid, p_hid) for (w, _) in params[1:-1]]))
        ops.append(jnp.stack([pad_b(b, p_hid) for (_, b) in params[1:-1]]))
    ops += [pad_w(params[-1][0], p_hid, p_out), pad_b(params[-1][1], p_out)]

    return dict(single_linear=False, num_mid=num_mid,
                in_dim=in_dim, out_dim=out_dim,
                p_in=p_in, p_hid=p_hid, p_out=p_out,
                ops=tuple(ops), compute_dtype=mxu_dtype)


# --------------------------------------------------------------------------- #
# VMEM budget & tiling
# --------------------------------------------------------------------------- #
def _vmem_limit_bytes() -> int:
    """Generation-aware scoped-VMEM limit: ~100 MiB on 128-MiB chips (v5e/v6e),
    ~52 MiB on v7x (64 MiB physical), with headroom left below physical."""
    cap = 128 << 20
    try:
        cap = int(getattr(pltpu.get_tpu_info(), "vmem_capacity_bytes", cap))
    except Exception:
        pass
    return int(max(32 << 20, min(cap - (12 << 20), 100 << 20)))


def _pick_tm(M: int, prep, vmem_limit: int) -> int:
    p_in, p_hid, p_out = prep["p_in"], prep["p_hid"], prep["p_out"]
    weight_bytes = sum(int(a.size) * a.dtype.itemsize for a in prep["ops"])
    # Per-row VMEM: double-buffered f32 input + output tiles plus ~3 f32
    # activation temporaries at the widest layer width.
    per_row = 4 * (2 * p_in + 2 * p_out + 3 * max(p_in, p_hid, p_out))
    budget = max(vmem_limit - weight_bytes - (4 << 20), per_row * _SUBLANE)
    tm_cap = max(_SUBLANE, (budget // per_row) // _SUBLANE * _SUBLANE)
    tm = int(min(512, tm_cap, _round_up(M, _SUBLANE)))
    # Megacore: ensure the "parallel" M axis has >= 2 tiles when possible so a
    # 2-TensorCore chip (v7x) keeps both cores busy.
    if M > _SUBLANE and _round_up(M, tm) // tm < 2:
        tm = _round_up(pl.cdiv(M, 2), _SUBLANE)
    return max(tm, _SUBLANE)


# --------------------------------------------------------------------------- #
# Forward
# --------------------------------------------------------------------------- #
def mlp_forward(x, prep):
    """Applies the fused MLP. x: (..., input_dim) -> (..., output_dim)."""
    orig_shape = x.shape
    x2d = x.reshape(-1, orig_shape[-1]).astype(jnp.float32)
    M = x2d.shape[0]
    in_dim, out_dim = prep["in_dim"], prep["out_dim"]
    p_in, p_hid, p_out = prep["p_in"], prep["p_hid"], prep["p_out"]
    num_mid = prep["num_mid"]
    ops = prep["ops"]

    vmem_limit = _vmem_limit_bytes()
    tm = _pick_tm(M, prep, vmem_limit)
    M_pad = _round_up(M, tm)

    x_pad = jnp.zeros((M_pad, p_in), jnp.float32).at[:M, :in_dim].set(x2d)

    kernel = _make_mlp_kernel(num_mid, prep["single_linear"], prep["compute_dtype"])

    def const_spec(arr):
        shape = arr.shape
        imap = lambda i, _n=len(shape): (0,) * _n
        try:
            # Constant index_map -> a single resident buffer is enough.
            return pl.BlockSpec(shape, imap, pipeline_mode=pl.Buffered(1))
        except Exception:
            return pl.BlockSpec(shape, imap)

    in_specs = [pl.BlockSpec((tm, p_in), lambda i: (i, 0))]
    in_specs += [const_spec(a) for a in ops]

    if prep["single_linear"]:
        flops = 2 * M_pad * p_in * p_out
        transcendentals = 0
    else:
        flops = 2 * M_pad * (p_in * p_hid + num_mid * p_hid * p_hid + p_hid * p_out)
        transcendentals = M_pad * p_hid * (1 + num_mid)
    bytes_accessed = (4 * M_pad * (p_in + p_out)
                      + sum(int(a.size) * a.dtype.itemsize for a in ops))

    out = pl.pallas_call(
        kernel,
        out_shape=jax.ShapeDtypeStruct((M_pad, p_out), jnp.float32),
        grid_spec=pltpu.PrefetchScalarGridSpec(
            num_scalar_prefetch=0,
            grid=(M_pad // tm,),
            in_specs=in_specs,
            out_specs=pl.BlockSpec((tm, p_out), lambda i: (i, 0)),  # lane-dense output
        ),
        compiler_params=pltpu.CompilerParams(
            dimension_semantics=("parallel",),        # shard M tiles across TCs
            vmem_limit_bytes=int(vmem_limit),
        ),
        cost_estimate=pl.CostEstimate(
            flops=int(flops),
            transcendentals=int(transcendentals),
            bytes_accessed=int(bytes_accessed),
        ),
    )(x_pad, *ops)

    y = out[:M, :out_dim]
    return y.reshape(orig_shape[:-1] + (out_dim,))


def mlp_reference(x, params):
    """Pure-JAX reference (eval mode: dropout = identity)."""
    x2d = x.reshape(-1, x.shape[-1])
    if len(params) == 1:
        w, b = params[0]
        y = x2d @ w + b
    else:
        y = x2d
        for (w, b) in params[:-1]:
            y = y @ w + b
            y = 0.5 * y * (1.0 + jax.lax.erf(y / jnp.sqrt(2.0)))
        w, b = params[-1]
        y = y @ w + b
    return y.reshape(x.shape[:-1] + (y.shape[-1],))


if __name__ == "__main__":
    input_dim, output_dim, hidden_dim, num_layers = 16, 8, 32, 2
    dropout = 0.1  # inactive in eval mode

    key = jax.random.PRNGKey(0)
    key, kx = jax.random.split(key)
    x = jax.random.normal(kx, (2, 8, input_dim), jnp.float32)

    params = init_mlp_params(key, input_dim, output_dim, hidden_dim, num_layers)
    ref = mlp_reference(x, params)

    # f32 MXU-operand path: faithful to the torch f32 reference.
    out_f32 = jax.block_until_ready(
        mlp_forward(x, prepare_mlp_params(params, mxu_dtype=jnp.float32)))
    assert out_f32.shape == (2, 8, output_dim), out_f32.shape
    assert jnp.allclose(out_f32, ref, atol=1e-4, rtol=1e-4), "f32 path mismatch"

    # bf16 MXU-operand path (f32 accumulation): v6e/v7x throughput path.
    out_bf16 = jax.block_until_ready(
        mlp_forward(x, prepare_mlp_params(params, mxu_dtype=jnp.bfloat16)))
    assert jnp.allclose(out_bf16, ref, atol=3e-2, rtol=3e-2), "bf16 path mismatch"

    # num_layers <= 0 degenerate case: a single Linear(input_dim, output_dim).
    params0 = init_mlp_params(jax.random.PRNGKey(1), input_dim, output_dim, hidden_dim, 0)
    x0 = jax.random.normal(jax.random.PRNGKey(2), (4, input_dim), jnp.float32)
    out0 = jax.block_until_ready(
        mlp_forward(x0, prepare_mlp_params(params0, mxu_dtype=jnp.float32)))
    assert jnp.allclose(out0, mlp_reference(x0, params0), atol=1e-4, rtol=1e-4), \
        "linear-only mismatch"

    # Deep MLP exercises the in-kernel fori_loop over the middle layers.
    params_deep = init_mlp_params(jax.random.PRNGKey(3), input_dim, output_dim, hidden_dim, 6)
    out_deep = jax.block_until_ready(
        mlp_forward(x, prepare_mlp_params(params_deep, mxu_dtype=jnp.float32)))
    assert jnp.allclose(out_deep, mlp_reference(x, params_deep), atol=1e-4, rtol=1e-4), \
        "deep-MLP mismatch"

    print("KERNEL_OK")
</pallas_src>

<mosaic_0001>
module attributes {stable_mosaic.version = 11 : i64} {
  func.func @kernel(%arg0: i32, %arg1: memref<8x128xf32, #tpu.memory_space<vmem>>, %arg2: memref<128x128xf32, #tpu.memory_space<vmem>>, %arg3: memref<1x128xf32, #tpu.memory_space<vmem>>, %arg4: memref<1x128x128xf32, #tpu.memory_space<vmem>>, %arg5: memref<1x1x128xf32, #tpu.memory_space<vmem>>, %arg6: memref<128x128xf32, #tpu.memory_space<vmem>>, %arg7: memref<1x128xf32, #tpu.memory_space<vmem>>, %arg8: memref<8x128xf32, #tpu.memory_space<vmem>>) attributes {dimension_semantics = [#tpu.dimension_semantics<parallel>], iteration_bounds = array<i64: 2>, scalar_prefetch = 0 : i64, scratch_operands = 0 : i64, tpu.core_type = #tpu.core_type<tc>, window_params = [{transform_indices = @transform_0, window_bounds = array<i64: 8, 128>}, {pipeline_mode = #tpu.pipeline_mode<synchronous>, transform_indices = @transform_1, window_bounds = array<i64: 128, 128>}, {pipeline_mode = #tpu.pipeline_mode<synchronous>, transform_indices = @transform_2, window_bounds = array<i64: 1, 128>}, {pipeline_mode = #tpu.pipeline_mode<synchronous>, transform_indices = @transform_3, window_bounds = array<i64: 1, 128, 128>}, {pipeline_mode = #tpu.pipeline_mode<synchronous>, transform_indices = @transform_4, window_bounds = array<i64: 1, 1, 128>}, {pipeline_mode = #tpu.pipeline_mode<synchronous>, transform_indices = @transform_5, window_bounds = array<i64: 128, 128>}, {pipeline_mode = #tpu.pipeline_mode<synchronous>, transform_indices = @transform_6, window_bounds = array<i64: 1, 128>}, {transform_indices = @transform_7, window_bounds = array<i64: 8, 128>}]} {
    %c0 = arith.constant 0 : index
    %c0_0 = arith.constant 0 : index
    %0 = vector.load %arg1[%c0, %c0_0] : memref<8x128xf32, #tpu.memory_space<vmem>>, vector<8x128xf32>
    %c0_1 = arith.constant 0 : index
    %c0_2 = arith.constant 0 : index
    %1 = vector.load %arg2[%c0_1, %c0_2] : memref<128x128xf32, #tpu.memory_space<vmem>>, vector<128x128xf32>
    %cst = arith.constant dense<0.000000e+00> : vector<8x128xf32>
    %2 = tpu.matmul %0, %1, %cst {dimension_numbers = #tpu.dot_dimension_numbers<[1], [0], [0], [1], [0, 0, 1, 1], [], []>} : vector<8x128xf32>, vector<128x128xf32>, vector<8x128xf32> -> vector<8x128xf32>
    %c0_3 = arith.constant 0 : index
    %c0_4 = arith.constant 0 : index
    %3 = vector.load %arg3[%c0_3, %c0_4] : memref<1x128xf32, #tpu.memory_space<vmem>>, vector<1x128xf32>
    %4 = vector.broadcast %3 : vector<1x128xf32> to vector<8x128xf32>
    %5 = arith.addf %2, %4 : vector<8x128xf32>
    %cst_5 = arith.constant 5.000000e-01 : f32
    %6 = vector.broadcast %cst_5 : f32 to vector<8x128xf32>
    %7 = arith.mulf %6, %5 : vector<8x128xf32>
    %cst_6 = arith.constant 0.707106769 : f32
    %8 = vector.broadcast %cst_6 : f32 to vector<8x128xf32>
    %9 = arith.mulf %5, %8 : vector<8x128xf32>
    %10 = math.erf %9 : vector<8x128xf32>
    %cst_7 = arith.constant 1.000000e+00 : f32
    %11 = vector.broadcast %cst_7 : f32 to vector<8x128xf32>
    %12 = arith.addf %11, %10 : vector<8x128xf32>
    %13 = arith.mulf %7, %12 : vector<8x128xf32>
    %c0_8 = arith.constant 0 : index
    %c0_9 = arith.constant 0 : index
    %c0_10 = arith.constant 0 : index
    %14 = vector.load %arg4[%c0_8, %c0_9, %c0_10] : memref<1x128x128xf32, #tpu.memory_space<vmem>>, vector<1x128x128xf32>
    %15 = vector.shape_cast %14 : vector<1x128x128xf32> to vector<128x128xf32>
    %cst_11 = arith.constant dense<0.000000e+00> : vector<8x128xf32>
    %16 = tpu.matmul %13, %15, %cst_11 {dimension_numbers = #tpu.dot_dimension_numbers<[1], [0], [0], [1], [0, 0, 1, 1], [], []>} : vector<8x128xf32>, vector<128x128xf32>, vector<8x128xf32> -> vector<8x128xf32>
    %c0_12 = arith.constant 0 : index
    %c0_13 = arith.constant 0 : index
    %c0_14 = arith.constant 0 : index
    %17 = vector.load %arg5[%c0_12, %c0_13, %c0_14] : memref<1x1x128xf32, #tpu.memory_space<vmem>>, vector<1x1x128xf32>
    %18 = vector.shape_cast %17 : vector<1x1x128xf32> to vector<1x128xf32>
    %19 = vector.broadcast %18 : vector<1x128xf32> to vector<8x128xf32>
    %20 = arith.addf %16, %19 : vector<8x128xf32>
    %cst_15 = arith.constant 5.000000e-01 : f32
    %21 = vector.broadcast %cst_15 : f32 to vector<8x128xf32>
    %22 = arith.mulf %21, %20 : vector<8x128xf32>
    %cst_16 = arith.constant 0.707106769 : f32
    %23 = vector.broadcast %cst_16 : f32 to vector<8x128xf32>
    %24 = arith.mulf %20, %23 : vector<8x128xf32>
    %25 = math.erf %24 : vector<8x128xf32>
    %cst_17 = arith.constant 1.000000e+00 : f32
    %26 = vector.broadcast %cst_17 : f32 to vector<8x128xf32>
    %27 = arith.addf %26, %25 : vector<8x128xf32>
    %28 = arith.mulf %22, %27 : vector<8x128xf32>
    %c0_18 = arith.constant 0 : index
    %c0_19 = arith.constant 0 : index
    %29 = vector.load %arg6[%c0_18, %c0_19] : memref<128x128xf32, #tpu.memory_space<vmem>>, vector<128x128xf32>
    %cst_20 = arith.constant dense<0.000000e+00> : vector<8x128xf32>
    %30 = tpu.matmul %28, %29, %cst_20 {dimension_numbers = #tpu.dot_dimension_numbers<[1], [0], [0], [1], [0, 0, 1, 1], [], []>} : vector<8x128xf32>, vector<128x128xf32>, vector<8x128xf32> -> vector<8x128xf32>
    %c0_21 = arith.constant 0 : index
    %c0_22 = arith.constant 0 : index
    %31 = vector.load %arg7[%c0_21, %c0_22] : memref<1x128xf32, #tpu.memory_space<vmem>>, vector<1x128xf32>
    %32 = vector.broadcast %31 : vector<1x128xf32> to vector<8x128xf32>
    %33 = arith.addf %30, %32 : vector<8x128xf32>
    %c0_23 = arith.constant 0 : index
    %c0_24 = arith.constant 0 : index
    %34 = vector.load %arg8[%c0_23, %c0_24] : memref<8x128xf32, #tpu.memory_space<vmem>>, vector<8x128xf32>
    tpu.vector_store %arg8[%c0_23, %c0_24], %33 {strides = array<i32>} : memref<8x128xf32, #tpu.memory_space<vmem>>, vector<8x128xf32>,
    return
  }
  func.func @transform_0(%arg0: i32) -> (i32, i32) {
    %c0_i32 = arith.constant 0 : i32
    %c0_i32_0 = arith.constant 0 : i32
    return %arg0, %c0_i32 : i32, i32
  }
  func.func @transform_1(%arg0: i32) -> (i32, i32) {
    %c0_i32 = arith.constant 0 : i32
    %c0_i32_0 = arith.constant 0 : i32
    %c0_i32_1 = arith.constant 0 : i32
    return %c0_i32, %c0_i32_0 : i32, i32
  }
  func.func @transform_2(%arg0: i32) -> (i32, i32) {
    %c0_i32 = arith.constant 0 : i32
    %c0_i32_0 = arith.constant 0 : i32
    %c0_i32_1 = arith.constant 0 : i32
    return %c0_i32, %c0_i32_0 : i32, i32
  }
  func.func @transform_3(%arg0: i32) -> (i32, i32, i32) {
    %c0_i32 = arith.constant 0 : i32
    %c0_i32_0 = arith.constant 0 : i32
    %c0_i32_1 = arith.constant 0 : i32
    %c0_i32_2 = arith.constant 0 : i32
    return %c0_i32, %c0_i32_0, %c0_i32_1 : i32, i32, i32
  }
  func.func @transform_4(%arg0: i32) -> (i32, i32, i32) {
    %c0_i32 = arith.constant 0 : i32
    %c0_i32_0 = arith.constant 0 : i32
    %c0_i32_1 = arith.constant 0 : i32
    %c0_i32_2 = arith.constant 0 : i32
    return %c0_i32, %c0_i32_0, %c0_i32_1 : i32, i32, i32
  }
  func.func @transform_5(%arg0: i32) -> (i32, i32) {
    %c0_i32 = arith.constant 0 : i32
    %c0_i32_0 = arith.constant 0 : i32
    %c0_i32_1 = arith.constant 0 : i32
    return %c0_i32, %c0_i32_0 : i32, i32
  }
  func.func @transform_6(%arg0: i32) -> (i32, i32) {
    %c0_i32 = arith.constant 0 : i32
    %c0_i32_0 = arith.constant 0 : i32
    %c0_i32_1 = arith.constant 0 : i32
    return %c0_i32, %c0_i32_0 : i32, i32
  }
  func.func @transform_7(%arg0: i32) -> (i32, i32) {
    %c0_i32 = arith.constant 0 : i32
    %c0_i32_0 = arith.constant 0 : i32
    return %arg0, %c0_i32 : i32, i32
  }
}

</mosaic_0001>

<bundles_post_ra>
// kernel: tpu_custom_call.1
= control target key start
LH: loop header
LB: loop body
LE: loop exit
PB: predicated region body
PF: predicated region fallthrough
CT: control target
= control target key end

     0   :  { %s1486_s0 = inlined_call_operand.hbm [shape: f32[16,128], index: 0, kind: input, shape index: {}]   ;;  %s1487_s1 = inlined_call_operand.hbm [shape: f32[128,128], index: 1, kind: input, shape index: {}]   ;;  %s1488_s2 = inlined_call_operand.vmem [shape: f32[1,128], index: 2, kind: input, shape index: {}]   ;;  %s1489_s3 = inlined_call_operand.hbm [shape: f32[1,128,128], index: 3, kind: input, shape index: {}]   ;;  %s1490_s4 = inlined_call_operand.vmem [shape: f32[1,1,128], index: 4, kind: input, shape index: {}]   ;;  %s1491_s5 = inlined_call_operand.hbm [shape: f32[128,128], index: 5, kind: input, shape index: {}]   ;;  %s1492_s6 = inlined_call_operand.vmem [shape: f32[1,128], index: 6, kind: input, shape index: {}]   ;;  %s1493_s7 = inlined_call_operand.hbm [shape: f32[16,128], index: 7, kind: output, shape index: {}]  }
   0x1   :  { %1498 = sst [smem:[#allocation15_spill]] %s1487_s1 }
   0x2   :  { %1499 = sst [smem:[#allocation16_spill]] %s1489_s3 }
   0x3   :  { %12 = vsyncpa [#allocation3], 0 }
   0x4   :  { %14 = vsyncpa [#allocation3 + $0x1], 0 }
   0x5   :  { %15 = vsyncpa [#allocation6], 0 }
   0x6   :  { %16 = vsyncpa [#allocation9], 0 }
   0x7   :  { %17 = vsyncpa [#allocation4], 0 }
   0x8   :  { %19 = vsyncpa [#allocation4 + $0x1], 0  ;;  %s1233_s24 = smov 0   ;;  %s1235_s25 = smov 0  }
   0x9   :  { %s1237_s26 = smov 0   ;;  %s1239_s27 = smov 0  }
   0xa LB: > { %s1254_s28 = sadd.s32 4294967295, %s1182_s27   ;;  %s742_s29 = sadd.s32 4294967294, %s1182_s27   ;;  %s1182_s27 = sphi %s1239_s27, %s1521_s27   ;;  %s1178_s26 = sphi %s1237_s26, %s1520_s26   ;;  %s1174_s25 = sphi %s1235_s25, %s1519_s25   ;;  %s1170_s24 = sphi %s1233_s24, %s1518_s24  }
   0xb   : > { %p45_p0 = scmp.ne.s32.totalorder %s1174_s25, %s1170_s24  ;;  %p1494_p1 = scmp.eq.s32.totalorder %s1254_s28, 0 }
   0xc   : > { %p201_p3 = scmp.eq.s32.totalorder %s742_s29, 1  ;;  %p743_p5 = scmp.ge.s32.totalorder %s1182_s27, 1 }
   0xd   : > { %p1263_p4 = por %p1494_p1, %p45_p0  ;;  %p208_p7 = scmp.lt.s32.totalorder %s1182_s27, 3 }
   0xe   : > { %p1268_p6 = por %p201_p3, %p45_p0  ;;  %s1184_s10 = smov [#allocation5]  }
   0xf   : > { %s1500_s30 = scalar_select %p1263_p4, 1, 0 }
  0x10   : > { %s1501_s8 = scalar_select %p1268_p6, 1, 0 }
  0x11   : > { %p1273_p8 = pnand %p743_p5, %p208_p7  ;;  %s220_s11 = sshll.u32 %s1184_s10, 4  ;;  %s221_s11 = int_to_ptr.vmem [resolvable:$true] %s220_s11 }
  0x12   : > { %s1185_s13 = smov [#allocation7]   ;;  %s1186_s15 = smov [#allocation8]  }
  0x13   : > { %s1502_s9 = scalar_select %p1273_p8, 1, 0 }
  0x14   : > { %p935_p9 = pneg %p1273_p8  ;;  %s236_s14 = sshll.u32 %s1185_s13, 4  ;;  %s237_s14 = int_to_ptr.vmem [resolvable:$true] %s236_s14 }
  0x15   : > { %s252_s16 = sshll.u32 %s1186_s15, 4  ;;  %s1015_s17 = scalar_lea.vmem %s221_s11, 2048  ;;  %s253_s16 = int_to_ptr.vmem [resolvable:$true] %s252_s16 }
  0x16   : > { %p1282_p11 = pnand %p935_p9, %p1494_p1  ;;  %p1016_p13 = scmp.ne.s32.totalorder %s221_s11, %s1015_s17 }
  0x17   : > { %p1023_p5 = scmp.lt.s32.totalorder %s221_s11, %s221_s11  ;;  %p1024_p7 = scmp.lt.s32.totalorder %s1015_s17, %s1015_s17 }
  0x18   : > { %p1006_p12 = pneg %p1282_p11 }
  0x19   : > { %p1025_p9 = por %p1024_p7, %p1023_p5 }
  0x1a   : > { %p1018_p0 = pnand %p1016_p13, %p1006_p12 }
  0x1c   : > { %p1019_p3 = pneg %p1018_p0 }
  0x1e   : > { %p1026_p10 = pnand %p1025_p9, %p1019_p3 }
  0x20   : > { %1029 = shalt.err (!%p1026_p10)
}
  0x21   : > { %s1187_s18 = smov 128   ;;  %s1188_s19 = smov 8  }
  0x22   : > { %s1504_s1 = sld [smem:[#allocation15_spill]]  ;;  %s1041_s22 = scalar_lea.vmem %s237_s14, 2048 }
  0x23   : > { %p1042_p1 = scmp.ne.s32.totalorder %s237_s14, %s1041_s22  ;;  %p1049_p2 = scmp.lt.s32.totalorder %s237_s14, %s237_s14 }
  0x24   : > { %p1050_p6 = scmp.lt.s32.totalorder %s1041_s22, %s1041_s22 }
  0x25   : > { %p1044_p13 = pnand %p1042_p1, %p1006_p12 }
  0x26   : > { %p1051_p5 = por %p1050_p6, %p1049_p2 }
  0x27   : > { %p1045_p0 = pneg %p1044_p13 }
  0x28   : > { %938 = dma.hbm_to_vmem [thread:$0]  (!%p1282_p11), %s1504_s1, 2048, %s221_s11, [#allocation6], %s1187_s18, %s1187_s18, %s1188_s19  }
  0x29   : > { %p1052_p3 = pnand %p1051_p5, %p1045_p0 }
  0x2b   : > { %1055 = shalt.err (!%p1052_p3)
}
  0x2c   : > { %s1505_s3 = sld [smem:[#allocation16_spill]]  ;;  %s1067_s10 = scalar_lea.vmem %s253_s16, 2048 }
  0x2d   : > { %p1068_p10 = scmp.ne.s32.totalorder %s253_s16, %s1067_s10  ;;  %p1075_p9 = scmp.lt.s32.totalorder %s253_s16, %s253_s16 }
  0x2e   : > { %p1076_p13 = scmp.lt.s32.totalorder %s1067_s10, %s1067_s10 }
  0x2f   : > { %p1070_p7 = pnand %p1068_p10, %p1006_p12 }
  0x30   : > { %p1077_p4 = por %p1076_p13, %p1075_p9 }
  0x31   : > { %p1071_p1 = pneg %p1070_p7 }
  0x32   : > { %941 = dma.hbm_to_vmem [thread:$0]  (!%p1282_p11), %s1505_s3, 2048, %s237_s14, [#allocation6], %s1187_s18, %s1187_s18, %s1188_s19  }
  0x33   : > { %p1078_p2 = pnand %p1077_p4, %p1071_p1 }
  0x35   : > { %1081 = shalt.err (!%p1078_p2)
}
  0x36   : > { %944 = dma.hbm_to_vmem [thread:$0]  (!%p1282_p11), %s1491_s5, 2048, %s253_s16, [#allocation9], %s1187_s18, %s1187_s18, %s1188_s19  }
  0x37   : > { %s1313_s14 = sadd.s32 1, %s1182_s27   ;;  %s32_s12 = sadd.s32 1, %s1178_s26 }
  0x38   : > { %s29_s15 = ssub.s32 %s1182_s27, %s1313_s14  ;;  %p39_p6 = scmp.ne.s32.totalorder %s1178_s26, %s1174_s25 }
  0x39   : > { %p30_p4 = scmp.eq.s32.totalorder %s29_s15, 0  ;;  %p40_p12 = scmp.eq.s32.totalorder %s1182_s27, 0 }
  0x3a   : > { %p956_p0 = scmp.lt.s32.totalorder %s1182_s27, 2  ;;  %p1506_p3 = scmp.eq.s32.totalorder %s1254_s28, 1 }
  0x3b   : > { %s1323_s17 = scalar_select %p30_p4, %s1178_s26, %s32_s12  }
  0x3c   : > { %p41_p5 = por %p40_p12, %p39_p6  ;;  %p1327_p10 = por %p1506_p3, %p39_p6 }
  0x3d   : > { %s269_s21 = sand.u32 1, %s1178_s26   ;;  %s749_s22 = sshll.u32 %s1182_s27, 7 }
  0x3e   : > { %s1507_s20 = scalar_select %p1327_p10, 1, 0 }
  0x3f   : > { %s748_s16 = sshll.u32 %s269_s21, 3  ;;  %s1336_s23 = scalar_lea.hbm %s1486_s0, %s749_s22 }
  0x40   : > { %s273_s29 = scalar_lea.vmem [#allocation2], %s748_s16  ;;  %p1338_p11 = pnand %p956_p0, %p41_p5 }
  0x41   : > { %s280_s10 = sshll.u32 %s273_s29, 4  ;;  %s270_s13 = scalar_lea.sflag [#allocation3], %s269_s21  ;;  %s281_s10 = int_to_ptr.vmem [resolvable:$true] %s280_s10 }
  0x42   : > { %s1082_s15 = scalar_lea.hbm %s1336_s23, 128  ;;  %p1084_p1 = pneg %p1338_p11 }
  0x43   : > { %p1083_p7 = scmp.ne.s32.totalorder %s1336_s23, %s1082_s15  ;;  %s1087_s18 = scalar_lea.hbm %s1486_s0, 256 }
  0x44   : > { %p1088_p2 = scmp.lt.s32.totalorder %s1336_s23, %s1486_s0  ;;  %p1089_p4 = scmp.lt.s32.totalorder %s1087_s18, %s1082_s15 }
  0x45   : > { %p1085_p9 = pnand %p1084_p1, %p1083_p7 }
  0x46   : > { %p1090_p6 = por %p1089_p4, %p1088_p2 }
  0x47   : > { %p1086_p13 = pneg %p1085_p9 }
  0x49   : > { %p1091_p12 = pnand %p1090_p6, %p1086_p13 }
  0x4b   : > { %1094 = shalt.err (!%p1091_p12)
}
  0x4c   : > { %s1095_s29 = scalar_lea.vmem %s281_s10, 128  ;;  %s1189_s21 = smov [#allocation2]  }
  0x4d   : > { %p1096_p0 = scmp.ne.s32.totalorder %s281_s10, %s1095_s29  ;;  %s1100_s1 = sshll.u32 %s1189_s21, 4  ;;  %s1101_s1 = int_to_ptr.vmem [resolvable:$false] %s1100_s1 }
  0x4e   : > { %s1102_s3 = scalar_lea.vmem %s1101_s1, 256  ;;  %p1103_p7 = scmp.lt.s32.totalorder %s281_s10, %s1101_s1 }
  0x4f   : > { %p1098_p5 = pnand %p1096_p0, %p1084_p1  ;;  %p1104_p9 = scmp.lt.s32.totalorder %s1102_s3, %s1095_s29 }
  0x51   : > { %p1099_p3 = pneg %p1098_p5  ;;  %p1105_p10 = por %p1104_p9, %p1103_p7 }
  0x53   : > { %p1106_p8 = pnand %p1105_p10, %p1099_p3 }
  0x55   : > { %1109 = shalt.err (!%p1106_p8)
}
  0x56   : > { %948 = dma.hbm_to_vmem [thread:$0]  (!%p1338_p11), %s1336_s23, 128, %s281_s10, %s270_s13  }
  0x57   : > { %p1509_p13 = scmp.ne.s32.totalorder %s1502_s9, 0 }
  0x58   : > { %s1359_s15 = sand.u32 (!%p1509_p13), 1, %s1174_s25   ;;  %p1510_p8 = scmp.ne.s32.totalorder (!%p1509_p13), %s1500_s30, 0 }
  0x59   : > { %289 = sbr.rel (%p1509_p13) target bundleno = 773 (0x305), region = 48  ;;  %s751_s12 = sshll.u32 (!%p1509_p13), %s1359_s15, 3 }
  0x5a   : > { %s292_s1 = scalar_lea.sflag (!%p1509_p13), [#allocation3], %s1359_s15  ;;  %s1365_s3 = scalar_lea.vmem (!%p1509_p13), [#allocation2], %s751_s12 }
  0x5e   : > { %1153 = dma.done.wait (%p1510_p8), %s292_s1, 128  }
  0x5f   : > { %1155 = vsyncadd (%p1510_p8), %s292_s1, 4294967168  ;;  %p1511_p10 = scmp.eq.s32.totalorder %s1254_s28, 0 }
  0x61   : > { %1157 = dma.done.wait (%p1511_p10), [#allocation6], 4096   ;;  %p1512_p11 = pmov %p1511_p10 }
  0x62   : > { %p1513_p1 = pmov %p1511_p10 }
  0x63   : > { %1159 = vsyncadd (%p1512_p11), [#allocation6], 4294963200 }
  0x64   : > { %1161 = dma.done.wait (%p1513_p1), [#allocation9], 2048   ;;  %p1514_p2 = pmov %p1513_p1 }
  0x65   : > { %v1190_v0 = vmov 0.0   ;;  %vm1191_vm0 = vmmov 0   ;;  %v354_v1 = vld [vmem:[#allocation5 + $0x78] sm:$0xff]  ;;  %v353_v2 = vld [vmem:[#allocation5 + $0x70] sm:$0xff]  ;;  %v352_v3 = vld [vmem:[#allocation5 + $0x68] sm:$0xff]  ;;  %s760_s22 = sshll.u32 %s1254_s28, 7 }
  0x66   : > { %1163 = vsyncadd (%p1514_p2), [#allocation9], 4294965248  ;;  %814 = vmatprep.subr.mxu0 %v1190_v0  ;;  %846 = vmatprep.mubr.msk.f32.mxu0 %vm1191_vm0, %v1190_v0  ;;  %v351_v4 = vld [vmem:[#allocation5 + $0x60] sm:$0xff]  ;;  %v452_v5 = vld [vmem:[#allocation7 + $0x78] sm:$0xff]  ;;  %s337_s18 = scalar_lea.vmem [#allocation10], %s751_s12  ;;  %s1449_s21 = scalar_lea.hbm %s1493_s7, %s760_s22 }
  0x67   : > { %849 = vmatprep.subr.mxu1 %v1190_v0  ;;  %881 = vmatprep.mubr.msk.f32.mxu1 %vm1191_vm0, %v1190_v0  ;;  %v350_v6 = vld [vmem:[#allocation5 + $0x58] sm:$0xff]  ;;  %v451_v7 = vld [vmem:[#allocation7 + $0x70] sm:$0xff]  ;;  %v450_v8 = vld [vmem:[#allocation7 + $0x68] sm:$0xff]  ;;  %s643_s19 = sshll.u32 %s337_s18, 4  ;;  %s630_s1 = scalar_lea.sflag [#allocation4], %s1359_s15  ;;  %s644_s19 = int_to_ptr.vmem [resolvable:$true] %s643_s19 }
  0x68   : > { %815 = vmatpush3.msra.mxu0 %v354_v1  ;;  %850 = vmatpush3.msra.mxu1 %v452_v5  ;;  %v349_v9 = vld [vmem:[#allocation5 + $0x50] sm:$0xff]  ;;  %v449_v10 = vld [vmem:[#allocation7 + $0x60] sm:$0xff]  ;;  %v348_v11 = vld [vmem:[#allocation5 + $0x48] sm:$0xff]  ;;  %p1515_p6 = scmp.ne.s32.totalorder %s1507_s20, 0  ;;  %s1192_s28 = smov [#allocation10]  }
  0x69   : > { %816 = vmatprep.subr.mxu0 %v1190_v0  ;;  %851 = vmatprep.subr.mxu1 %v1190_v0  ;;  %v347_v12 = vld [vmem:[#allocation5 + $0x40] sm:$0xff]  ;;  %v346_v13 = vld [vmem:[#allocation5 + $0x38] sm:$0xff]  ;;  %v345_v14 = vld [vmem:[#allocation5 + $0x30] sm:$0xff]  ;;  %s1114_s30 = sshll.u32 %s1192_s28, 4  ;;  %s1115_s30 = int_to_ptr.vmem [resolvable:$false] %s1114_s30 }
  0x6a   : > { %817 = vmatpush3.msra.mxu0 %v353_v2  ;;  %852 = vmatpush3.msra.mxu1 %v451_v7  ;;  %v344_v15 = vld [vmem:[#allocation5 + $0x28] sm:$0xff]  ;;  %v343_v16 = vld [vmem:[#allocation5 + $0x20] sm:$0xff]  ;;  %v342_v17 = vld [vmem:[#allocation5 + $0x18] sm:$0xff]  ;;  %s1116_s12 = scalar_lea.vmem %s1115_s30, 256  ;;  %p1117_p5 = scmp.lt.s32.totalorder %s644_s19, %s1115_s30 }
  0x6b   : > { %818 = vmatprep.subr.mxu0 %v1190_v0  ;;  %853 = vmatprep.subr.mxu1 %v1190_v0  ;;  %v341_v18 = vld [vmem:[#allocation5 + $0x10] sm:$0xff]  ;;  %v340_v19 = vld [vmem:[#allocation5 + $0x8] sm:$0xff]  ;;  %v339_v20 = vld [vmem:[#allocation5] sm:$0xff] }
  0x6c   : > { %819 = vmatpush3.msra.mxu0 %v352_v3  ;;  %854 = vmatpush3.msra.mxu1 %v450_v8  ;;  %v338_v21 = vld [vmem:[%s1365_s3] sm:$0xff]  ;;  %v446_v24 = vld [vmem:[#allocation7 + $0x48] sm:$0xff]  ;;  %v445_v25 = vld [vmem:[#allocation7 + $0x40] sm:$0xff]  ;;  %s1110_s3 = scalar_lea.vmem %s644_s19, 128 }
  0x6d   : > { %820 = vmatprep.subr.mxu0 %v1190_v0  ;;  %855 = vmatprep.subr.mxu1 %v1190_v0  ;;  %v448_v22 = vld [vmem:[#allocation7 + $0x58] sm:$0xff]  ;;  %v447_v23 = vld [vmem:[#allocation7 + $0x50] sm:$0xff]  ;;  %v442_v28 = vld [vmem:[#allocation7 + $0x28] sm:$0xff]  ;;  %p1111_p4 = scmp.ne.s32.totalorder %s644_s19, %s1110_s3  ;;  %p1118_p3 = scmp.lt.s32.totalorder %s1116_s12, %s1110_s3 }
  0x6e   : > { %821 = vmatpush3.msra.mxu0 %v351_v4  ;;  %856 = vmatpush3.msra.mxu1 %v449_v10  ;;  %v444_v26 = vld [vmem:[#allocation7 + $0x38] sm:$0xff]  ;;  %v443_v27 = vld [vmem:[#allocation7 + $0x30] sm:$0xff]  ;;  %v441_v29 = vld [vmem:[#allocation7 + $0x20] sm:$0xff] }
  0x6f   : > { %822 = vmatprep.subr.mxu0 %v1190_v0  ;;  %857 = vmatprep.subr.mxu1 %v1190_v0  ;;  %v440_v30 = vld [vmem:[#allocation7 + $0x18] sm:$0xff]  ;;  %v439_v31 = vld [vmem:[#allocation7 + $0x10] sm:$0xff]  ;;  %v438_v32 = vld [vmem:[#allocation7 + $0x8] sm:$0xff]  ;;  %p1112_p12 = pnand %p1111_p4, %p1515_p6  ;;  %p1119_p7 = por %p1118_p3, %p1117_p5 }
  0x70   : > { %823 = vmatpush3.msra.mxu0 %v350_v6  ;;  %858 = vmatpush3.msra.mxu1 %v448_v22  ;;  %v437_v33 = vld [vmem:[#allocation7] sm:$0xff]  ;;  %v550_v34 = vld [vmem:[#allocation8 + $0x78] sm:$0xff]  ;;  %v549_v35 = vld [vmem:[#allocation8 + $0x70] sm:$0xff] }
  0x71   : > { %824 = vmatprep.subr.mxu0 %v1190_v0  ;;  %859 = vmatprep.subr.mxu1 %v1190_v0  ;;  %v548_v36 = vld [vmem:[#allocation8 + $0x68] sm:$0xff]  ;;  %v547_v37 = vld [vmem:[#allocation8 + $0x60] sm:$0xff]  ;;  %v756_v38 = vld [vmem:[%s1488_s2] ss:$0 sm:$0xff]  ;;  %p1113_p0 = pneg %p1112_p12 }
  0x72   : > { %825 = vmatpush3.msra.mxu0 %v349_v9  ;;  %860 = vmatpush3.msra.mxu1 %v447_v23  ;;  %v546_v47 = vld [vmem:[#allocation8 + $0x58] sm:$0xff]  ;;  %v545_v48 = vld [vmem:[#allocation8 + $0x50] sm:$0xff]  ;;  %v544_v49 = vld [vmem:[#allocation8 + $0x48] sm:$0xff] }
  0x73   : > { %826 = vmatprep.subr.mxu0 %v1190_v0  ;;  %861 = vmatprep.subr.mxu1 %v1190_v0  ;;  %v543_v50 = vld [vmem:[#allocation8 + $0x40] sm:$0xff]  ;;  %v542_v51 = vld [vmem:[#allocation8 + $0x38] sm:$0xff]  ;;  %v541_v52 = vld [vmem:[#allocation8 + $0x30] sm:$0xff]  ;;  %p1120_p9 = pnand %p1119_p7, %p1113_p0 }
  0x74   : > { %827 = vmatpush3.msra.mxu0 %v348_v11  ;;  %862 = vmatpush3.msra.mxu1 %v446_v24  ;;  %v540_v53 = vld [vmem:[#allocation8 + $0x28] sm:$0xff]  ;;  %v539_v54 = vld [vmem:[#allocation8 + $0x20] sm:$0xff]  ;;  %v538_v55 = vld [vmem:[#allocation8 + $0x18] sm:$0xff] }
  0x75   : > { %828 = vmatprep.subr.mxu0 %v1190_v0  ;;  %863 = vmatprep.subr.mxu1 %v1190_v0  ;;  %v537_v56 = vld [vmem:[#allocation8 + $0x10] sm:$0xff]  ;;  %v536_v57 = vld [vmem:[#allocation8 + $0x8] sm:$0xff]  ;;  %v535_v58 = vld [vmem:[#allocation8] sm:$0xff] }
  0x76   : > { %829 = vmatpush3.msra.mxu0 %v347_v12  ;;  %864 = vmatpush3.msra.mxu1 %v445_v25  ;;  %v757_v59 = vld [vmem:[%s1490_s4] ss:$0 sm:$0xff] }
  0x77   : > { %830 = vmatprep.subr.mxu0 %v1190_v0  ;;  %865 = vmatprep.subr.mxu1 %v1190_v0 }
  0x78   : > { %831 = vmatpush3.msra.mxu0 %v346_v13  ;;  %866 = vmatpush3.msra.mxu1 %v444_v26 }
  0x79   : > { %832 = vmatprep.subr.mxu0 %v1190_v0  ;;  %867 = vmatprep.subr.mxu1 %v1190_v0 }
  0x7a   : > { %833 = vmatpush3.msra.mxu0 %v345_v14  ;;  %868 = vmatpush3.msra.mxu1 %v443_v27 }
  0x7b   : > { %834 = vmatprep.subr.mxu0 %v1190_v0  ;;  %869 = vmatprep.subr.mxu1 %v1190_v0 }
  0x7c   : > { %835 = vmatpush3.msra.mxu0 %v344_v15  ;;  %870 = vmatpush3.msra.mxu1 %v442_v28 }
  0x7d   : > { %836 = vmatprep.subr.mxu0 %v1190_v0  ;;  %871 = vmatprep.subr.mxu1 %v1190_v0 }
  0x7e   : > { %837 = vmatpush3.msra.mxu0 %v343_v16  ;;  %872 = vmatpush3.msra.mxu1 %v441_v29 }
  0x7f   : > { %838 = vmatprep.subr.mxu0 %v1190_v0  ;;  %873 = vmatprep.subr.mxu1 %v1190_v0 }
  0x80   : > { %839 = vmatpush3.msra.mxu0 %v342_v17  ;;  %874 = vmatpush3.msra.mxu1 %v440_v30 }
  0x81   : > { %840 = vmatprep.subr.mxu0 %v1190_v0  ;;  %875 = vmatprep.subr.mxu1 %v1190_v0 }
  0x82   : > { %841 = vmatpush3.msra.mxu0 %v341_v18  ;;  %876 = vmatpush3.msra.mxu1 %v439_v31 }
  0x83   : > { %842 = vmatprep.subr.mxu0 %v1190_v0  ;;  %877 = vmatprep.subr.mxu1 %v1190_v0 }
  0x84   : > { %843 = vmatpush3.msra.mxu0 %v340_v19  ;;  %878 = vmatpush3.msra.mxu1 %v438_v32 }
  0x85   : > { %844 = vmatprep.subr.mxu0 %v1190_v0  ;;  %879 = vmatprep.subr.mxu1 %v1190_v0 }
  0x86   : > { %845 = vmatpush3.msra.mxu0 %v339_v20  ;;  %880 = vmatpush3.msra.mxu1 %v437_v33 }
  0x87   : > { %847 = vmatmul.mubr.f32.vlgmr.msra.gmra.mxu0 %v338_v21  ;;  %884 = vmatprep.subr.mxu0 %v1190_v0 }
  0x88   : > { %916 = vmatprep.mubr.msk.f32.mxu0 %vm1191_vm0, %v1190_v0  ;;  %885 = vmatpush3.msra.mxu0 %v550_v34 }
  0x89   : > { %886 = vmatprep.subr.mxu0 %v1190_v0 }
  0x8a   : > { %887 = vmatpush3.msra.mxu0 %v549_v35 }
  0x8b   : > { %888 = vmatprep.subr.mxu0 %v1190_v0 }
  0x8c   : > { %889 = vmatpush3.msra.mxu0 %v548_v36 }
  0x8d   : > { %890 = vmatprep.subr.mxu0 %v1190_v0 }
  0x8e   : > { %891 = vmatpush3.msra.mxu0 %v547_v37 }
  0x8f   : > { %892 = vmatprep.subr.mxu0 %v1190_v0 }
  0x90   : > { %893 = vmatpush3.msra.mxu0 %v546_v47 }
  0x91   : > { %894 = vmatprep.subr.mxu0 %v1190_v0 }
  0x92   : > { %895 = vmatpush3.msra.mxu0 %v545_v48 }
  0x93   : > { %896 = vmatprep.subr.mxu0 %v1190_v0 }
  0x94   : > { %897 = vmatpush3.msra.mxu0 %v544_v49 }
  0x95   : > { %898 = vmatprep.subr.mxu0 %v1190_v0 }
  0x96   : > { %899 = vmatpush3.msra.mxu0 %v543_v50 }
  0x97   : > { %900 = vmatprep.subr.mxu0 %v1190_v0 }
  0x98   : > { %901 = vmatpush3.msra.mxu0 %v542_v51 }
  0x99   : > { %902 = vmatprep.subr.mxu0 %v1190_v0 }
  0x9a   : > { %903 = vmatpush3.msra.mxu0 %v541_v52 }
  0x9b   : > { %904 = vmatprep.subr.mxu0 %v1190_v0 }
  0x9c   : > { %905 = vmatpush3.msra.mxu0 %v540_v53 }
  0x9d   : > { %906 = vmatprep.subr.mxu0 %v1190_v0 }
  0x9e   : > { %907 = vmatpush3.msra.mxu0 %v539_v54 }
  0x9f   : > { %908 = vmatprep.subr.mxu0 %v1190_v0 }
  0xa0   : > { %909 = vmatpush3.msra.mxu0 %v538_v55 }
  0xa1   : > { %910 = vmatprep.subr.mxu0 %v1190_v0 }
  0xa2   : > { %911 = vmatpush3.msra.mxu0 %v537_v56 }
  0xa3   : > { %912 = vmatprep.subr.mxu0 %v1190_v0 }
  0xa4   : > { %913 = vmatpush3.msra.mxu0 %v536_v57 }
  0xa5   : > { %914 = vmatprep.subr.mxu0 %v1190_v0  ;;  %v758_v0 = vld [vmem:[%s1492_s6] ss:$0 sm:$0xff] }
  0xa6   : > { %915 = vmatpush3.msra.mxu0 %v535_v58 }
 0x147   : > { %v428_v39 = vpop.f32.mrf.mxu0 }
 0x148   : > { %v429_v40 = vadd.f32 %v756_v38, %v428_v39 }
 0x149   : > { %v848_v41 = vpop.f32.mrf.mxu0 }
 0x14a   : > { %v433_v42 = vmul.f32 0.70710677, %v429_v40  ;;  %v432_v44 = vmul.f32 0.5, %v429_v40 }
 0x14c   : > { %1000 = verf.f32 %v433_v42 }
 0x159   : > { %v1001_v43 = vpop.eup %1000 }
 0x15a   : > { %v435_v45 = vadd.f32 1.0, %v1001_v43 }
 0x15c   : > { %v436_v46 = vmul.f32 %v435_v45, %v432_v44 }
 0x15e   : > { %882 = vmatmul.mubr.f32.vlgmr.msra.gmra.mxu1 %v436_v46 }
 0x21e   : > { %v526_v60 = vpop.f32.mrf.mxu1 }
 0x21f   : > { %v527_v61 = vadd.f32 %v757_v59, %v526_v60 }
 0x220   : > { %v883_v62 = vpop.f32.mrf.mxu1 }
 0x221   : > { %v531_v63 = vmul.f32 0.70710677, %v527_v61  ;;  %v530_v2 = vmul.f32 0.5, %v527_v61 }
 0x223   : > { %1002 = verf.f32 %v531_v63 }
 0x230   : > { %v1003_v1 = vpop.eup %1002 }
 0x231   : > { %v533_v3 = vadd.f32 1.0, %v1003_v1 }
 0x233   : > { %v534_v4 = vmul.f32 %v533_v3, %v530_v2 }
 0x235   : > { %917 = vmatmul.mubr.f32.vlgmr.msra.gmra.mxu0 %v534_v4 }
 0x2f5   : > { %v624_v5 = vpop.f32.mrf.mxu0 }
 0x2f6   : > { %v625_v6 = vadd.f32 %v758_v0, %v624_v5 }
 0x2f7   : > { %v918_v7 = vpop.f32.mrf.mxu0 }
 0x2f8   : > { %628 = vst [vmem:[%s337_s18] sm:$0xff] %v625_v6 }
 0x2f9   : > { %1123 = shalt.err (!%p1120_p9)
}
 0x2fa   : > { %s1124_s9 = scalar_lea.hbm %s1449_s21, 128  ;;  %s1128_s10 = scalar_lea.hbm %s1493_s7, 256 }
 0x2fb   : > { %p1125_p13 = scmp.ne.s32.totalorder %s1449_s21, %s1124_s9  ;;  %p1129_p11 = scmp.lt.s32.totalorder %s1449_s21, %s1493_s7 }
 0x2fc   : > { %p1130_p1 = scmp.lt.s32.totalorder %s1128_s10, %s1124_s9 }
 0x2fd   : > { %p1126_p8 = pnand %p1125_p13, %p1515_p6 }
 0x2fe   : > { %p1131_p2 = por %p1130_p1, %p1129_p11 }
 0x2ff   : > { %p1127_p10 = pneg %p1126_p8 }
 0x301   : > { %p1132_p4 = pnand %p1131_p2, %p1127_p10 }
 0x303   : > { %1135 = shalt.err (!%p1132_p4)
}
 0x304   : > { %933 = dma.vmem_to_hbm [thread:$0]  (%p1515_p6), %s644_s19, 128, %s1449_s21, %s630_s1  }
 0x305 PF: > { %s655_s22 = sand.u32 1, %s1170_s24   ;;  %p1516_p12 = scmp.ne.s32.totalorder %s1501_s8, 0 }
 0x306   : > { %p1517_p0 = scmp.ge.s32.totalorder %s1182_s27, 2  ;;  %s656_s18 = scalar_lea.sflag [#allocation4], %s655_s22 }
 0x308   : > { %p950_p5 = pnand %p1517_p0, %p1516_p12 }
 0x30a   : > { %p951_p3 = pneg %p950_p5 }
 0x30c   : > { %1165 = dma.done.wait (%p951_p3), %s656_s18, 128  }
 0x30d   : > { %1167 = vsyncadd (%p951_p3), %s656_s18, 4294967168  ;;  %p22_p7 = scmp.ge.s32.totalorder %s1313_s14, 4   ;;  %s1518_s24 = smov %s1174_s25 }
 0x30e   : > { %s1519_s25 = smov %s1178_s26  ;;  %s1520_s26 = smov %s1323_s17 }
 0x30f   : > { %s1521_s27 = smov %s1313_s14  ;;  %24 = sbr.rel (!%p22_p7) target bundleno = 10 (0xa), region = 105 }
 0x314   :  { %661 = vsyncpa [#allocation3], 1 }
 0x315   :  { %663 = vsyncpa [#allocation3 + $0x1], 1 }
 0x316   :  { %664 = vsyncpa [#allocation6], 1 }
 0x317   :  { %665 = vsyncpa [#allocation9], 1 }
 0x318   :  { %666 = vsyncpa [#allocation4], 1 }
 0x319   :  { %668 = vsyncpa [#allocation4 + $0x1], 1 }

</bundles_post_ra>
